<compile_context>
chip_gen: v7x
topology: tpu7x:2x2x1
jax: 0.10.0
libtpu: 0.0.40
codegen_flags: <defaults>
</compile_context>

<pallas_src>
import functools

import jax
import jax.numpy as jnp
from jax import lax
from jax.experimental import pallas as pl
from jax.experimental.pallas import tpu as pltpu


def _round_up(x, m):
    return ((x + m - 1) // m) * m


def _padded_tile_bytes(rows, cols, dtype):
    """VMEM footprint of a (rows, cols) buffer under (8, 128) vreg tiling."""
    itemsize = jnp.dtype(dtype).itemsize
    sublane = 8 * max(1, 4 // itemsize)  # sub-32-bit dtypes pack along sublanes
    return _round_up(rows, sublane) * _round_up(cols, 128) * itemsize


def _vmem_capacity_bytes():
    try:
        info = pltpu.get_tpu_info()
        cap = getattr(info, "vmem_capacity_bytes", None)
        if cap:
            return int(cap)
    except Exception:
        pass
    return 64 * 1024 * 1024  # conservative fallback: v7x per-TC VMEM


def _score_kernel(u_idx_ref, p_idx_ref, n_idx_ref,   # (1, TB) int32 index blocks
                  user_t_ref, item_t_ref,            # (E, U) / (E, I) VMEM-resident
                  out_ref):                          # (2, TB) scores
    U = user_t_ref.shape[1]
    I = item_t_ref.shape[1]
    TB = out_ref.shape[1]

    u_idx = u_idx_ref[...]                            # (1, TB)
    p_idx = p_idx_ref[...]
    n_idx = n_idx_ref[...]

    iota_u = lax.broadcasted_iota(jnp.int32, (U, TB), 0)
    iota_i = lax.broadcasted_iota(jnp.int32, (I, TB), 0)

    tdt = user_t_ref.dtype
    oh_u = (iota_u == u_idx).astype(tdt)              # (U, TB) one-hot, lane-dense
    oh_p = (iota_i == p_idx).astype(tdt)              # (I, TB)
    oh_n = (iota_i == n_idx).astype(tdt)              # (I, TB)

    # Vectorized gather on the MXU: (E, vocab) @ (vocab, TB) -> (E, TB).
    # Embed-dim on sublanes, batch on lanes => fully dense vregs for E <= 128.
    # HIGHEST precision keeps the f32 one-hot selection exact (1e-5 check).
    gat = functools.partial(jnp.dot,
                            preferred_element_type=jnp.float32,
                            precision=lax.Precision.HIGHEST)
    u_e = gat(user_t_ref[...], oh_u)                  # (E, TB)
    p_e = gat(item_t_ref[...], oh_p)                  # (E, TB)
    n_e = gat(item_t_ref[...], oh_n)                  # (E, TB)

    # Sublane reduce over E; lane-dense (1, TB) full-width stores.
    out_ref[0:1, :] = jnp.sum(u_e * p_e, axis=0, keepdims=True)   # posScores
    out_ref[1:2, :] = jnp.sum(u_e * n_e, axis=0, keepdims=True)   # negScores


def fedavg_scores(embed_user_tbl, embed_item_tbl, users, pos_items, neg_items,
                  *, block_b=512):
    """Forward pass of FedAvgOne. Returns (posScores [B], negScores [B])."""
    B = users.shape[0]
    U, E = embed_user_tbl.shape
    I, _ = embed_item_tbl.shape
    tbl_dtype = embed_user_tbl.dtype

    # Lane-dense batch tile (multiple of 128).
    TB = min(_round_up(block_b, 128), _round_up(B, 128))
    B_pad = _round_up(B, TB)
    pad = B_pad - B

    # Indices as (1, B_pad) lane-major int32 rows -> per-tile (1, TB) VMEM blocks.
    users_p = jnp.pad(users.astype(jnp.int32), (0, pad)).reshape(1, B_pad)
    pos_p = jnp.pad(pos_items.astype(jnp.int32), (0, pad)).reshape(1, B_pad)
    neg_p = jnp.pad(neg_items.astype(jnp.int32), (0, pad)).reshape(1, B_pad)

    # Tables transposed to (E, vocab): lane-dense storage for E < 128 and
    # directly the layout the one-hot MXU gather consumes.
    user_t = embed_user_tbl.T
    item_t = embed_item_tbl.T

    # Layout-aware VMEM estimate ((8,128) padding) + generation-aware cap.
    tbl_bytes = (_padded_tile_bytes(E, U, tbl_dtype)
                 + _padded_tile_bytes(E, I, tbl_dtype))            # Buffered(1)
    idx_bytes = 3 * 2 * _padded_tile_bytes(1, TB, jnp.int32)        # double-buffered
    out_bytes = 2 * _padded_tile_bytes(2, TB, jnp.float32)          # double-buffered
    onehot_bytes = (_round_up(U, 8) + 2 * _round_up(I, 8)) * _round_up(TB, 128) * 4
    emb_bytes = 3 * _round_up(E, 8) * _round_up(TB, 128) * 4
    est = tbl_bytes + idx_bytes + out_bytes + onehot_bytes + emb_bytes + (1 << 20)

    vmem_cap = int(0.85 * _vmem_capacity_bytes())   # headroom for compiler scratch
    vmem_budget = int(min(vmem_cap, max(est, 16 * 1024 * 1024)))

    # TODO(synk): if est exceeds vmem_cap (huge tables), fall back to an HBM
    # (memory_space=pl.ANY) manual row-gather path instead of VMEM residency.

    cost = pl.CostEstimate(
        flops=int(2 * E * B_pad * (U + 2 * I) + 4 * B_pad * E),
        transcendentals=0,
        bytes_accessed=int((U + I) * E * jnp.dtype(tbl_dtype).itemsize
                           + 3 * B_pad * 4 + 2 * B_pad * 4),
    )

    grid = (B_pad // TB,)
    out = pl.pallas_call(
        _score_kernel,
        out_shape=jax.ShapeDtypeStruct((2, B_pad), jnp.float32),
        grid=grid,
        in_specs=[
            pl.BlockSpec((1, TB), lambda i: (0, i)),   # users
            pl.BlockSpec((1, TB), lambda i: (0, i)),   # posItems
            pl.BlockSpec((1, TB), lambda i: (0, i)),   # negItems
            # Constant-index resident tables: single-buffered.
            pl.BlockSpec((E, U), lambda i: (0, 0), pipeline_mode=pl.Buffered(1)),
            pl.BlockSpec((E, I), lambda i: (0, 0), pipeline_mode=pl.Buffered(1)),
        ],
        out_specs=pl.BlockSpec((2, TB), lambda i: (0, i)),
        compiler_params=pltpu.CompilerParams(
            # "arbitrary": megacore sharding would duplicate the shared table
            # DMA into each TensorCore's private VMEM on v7x.
            dimension_semantics=("arbitrary",),
            vmem_limit_bytes=vmem_budget,
        ),
        cost_estimate=cost,
    )(users_p, pos_p, neg_p, user_t, item_t)

    return out[0, :B], out[1, :B]


if __name__ == "__main__":
    # Small, module-consistent shapes.
    userCount, itemCount, embedSize = 16, 24, 32
    B = 8

    key = jax.random.PRNGKey(0)
    k_u, k_i, k_users, k_pos, k_neg = jax.random.split(key, 5)

    # Deterministic synthetic "server" embedding tables (what setServerEmbed
    # would install); normal init mimics nn.Embedding's default N(0, 1).
    embed_user_tbl = jax.random.normal(k_u, (userCount, embedSize), jnp.float32)
    embed_item_tbl = jax.random.normal(k_i, (itemCount, embedSize), jnp.float32)

    users = jax.random.randint(k_users, (B,), 0, userCount, jnp.int32)
    pos_items = jax.random.randint(k_pos, (B,), 0, itemCount, jnp.int32)
    neg_items = jax.random.randint(k_neg, (B,), 0, itemCount, jnp.int32)
    seqs = None  # unused by forward(), kept for signature parity

    pos_scores, neg_scores = fedavg_scores(
        embed_user_tbl, embed_item_tbl, users, pos_items, neg_items
    )
    jax.block_until_ready((pos_scores, neg_scores))

    # Reference check against plain-JAX forward.
    ref_pos = jnp.sum(embed_user_tbl[users] * embed_item_tbl[pos_items], axis=-1)
    ref_neg = jnp.sum(embed_user_tbl[users] * embed_item_tbl[neg_items], axis=-1)
    assert jnp.allclose(pos_scores, ref_pos, atol=1e-5), "posScores mismatch"
    assert jnp.allclose(neg_scores, ref_neg, atol=1e-5), "negScores mismatch"

    print("KERNEL_OK")
</pallas_src>

<mosaic_0001>
module attributes {stable_mosaic.version = 11 : i64} {
  func.func @_score_kernel(%arg0: i32, %arg1: memref<1x128xi32, #tpu.memory_space<vmem>>, %arg2: memref<1x128xi32, #tpu.memory_space<vmem>>, %arg3: memref<1x128xi32, #tpu.memory_space<vmem>>, %arg4: memref<32x16xf32, #tpu.memory_space<vmem>>, %arg5: memref<32x24xf32, #tpu.memory_space<vmem>>, %arg6: memref<2x128xf32, #tpu.memory_space<vmem>>) attributes {dimension_semantics = [#tpu.dimension_semantics<arbitrary>], iteration_bounds = array<i64: 1>, scalar_prefetch = 0 : i64, scratch_operands = 0 : i64, tpu.core_type = #tpu.core_type<tc>, window_params = [{transform_indices = @transform_0, window_bounds = array<i64: 1, 128>}, {transform_indices = @transform_1, window_bounds = array<i64: 1, 128>}, {transform_indices = @transform_2, window_bounds = array<i64: 1, 128>}, {pipeline_mode = #tpu.pipeline_mode<synchronous>, transform_indices = @transform_3, window_bounds = array<i64: 32, 16>}, {pipeline_mode = #tpu.pipeline_mode<synchronous>, transform_indices = @transform_4, window_bounds = array<i64: 32, 24>}, {transform_indices = @transform_5, window_bounds = array<i64: 2, 128>}]} {
    %c0 = arith.constant 0 : index
    %c0_0 = arith.constant 0 : index
    %0 = vector.load %arg1[%c0, %c0_0] : memref<1x128xi32, #tpu.memory_space<vmem>>, vector<1x128xi32>
    %c0_1 = arith.constant 0 : index
    %c0_2 = arith.constant 0 : index
    %1 = vector.load %arg2[%c0_1, %c0_2] : memref<1x128xi32, #tpu.memory_space<vmem>>, vector<1x128xi32>
    %c0_3 = arith.constant 0 : index
    %c0_4 = arith.constant 0 : index
    %2 = vector.load %arg3[%c0_3, %c0_4] : memref<1x128xi32, #tpu.memory_space<vmem>>, vector<1x128xi32>
    %3 = tpu.iota {dimensions = array<i32: 0>} : vector<16x128xi32>
    %4 = tpu.iota {dimensions = array<i32: 0>} : vector<24x128xi32>
    %5 = vector.broadcast %0 : vector<1x128xi32> to vector<16x128xi32>
    %6 = arith.cmpi eq, %3, %5 : vector<16x128xi32>
    %7 = arith.extui %6 : vector<16x128xi1> to vector<16x128xi32>
    %8 = arith.sitofp %7 : vector<16x128xi32> to vector<16x128xf32>
    %9 = vector.broadcast %1 : vector<1x128xi32> to vector<24x128xi32>
    %10 = arith.cmpi eq, %4, %9 : vector<24x128xi32>
    %11 = arith.extui %10 : vector<24x128xi1> to vector<24x128xi32>
    %12 = arith.sitofp %11 : vector<24x128xi32> to vector<24x128xf32>
    %13 = vector.broadcast %2 : vector<1x128xi32> to vector<24x128xi32>
    %14 = arith.cmpi eq, %4, %13 : vector<24x128xi32>
    %15 = arith.extui %14 : vector<24x128xi1> to vector<24x128xi32>
    %16 = arith.sitofp %15 : vector<24x128xi32> to vector<24x128xf32>
    %c0_5 = arith.constant 0 : index
    %c0_6 = arith.constant 0 : index
    %17 = vector.load %arg4[%c0_5, %c0_6] : memref<32x16xf32, #tpu.memory_space<vmem>>, vector<32x16xf32>
    %cst = arith.constant dense<0.000000e+00> : vector<32x128xf32>
    %18 = tpu.matmul %17, %8, %cst {dimension_numbers = #tpu.dot_dimension_numbers<[1], [0], [0], [1], [0, 0, 1, 1], [], []>, precision = #tpu.contract_precision<fp32>} : vector<32x16xf32>, vector<16x128xf32>, vector<32x128xf32> -> vector<32x128xf32>
    %c0_7 = arith.constant 0 : index
    %c0_8 = arith.constant 0 : index
    %19 = vector.load %arg5[%c0_7, %c0_8] : memref<32x24xf32, #tpu.memory_space<vmem>>, vector<32x24xf32>
    %cst_9 = arith.constant dense<0.000000e+00> : vector<32x128xf32>
    %20 = tpu.matmul %19, %12, %cst_9 {dimension_numbers = #tpu.dot_dimension_numbers<[1], [0], [0], [1], [0, 0, 1, 1], [], []>, precision = #tpu.contract_precision<fp32>} : vector<32x24xf32>, vector<24x128xf32>, vector<32x128xf32> -> vector<32x128xf32>
    %c0_10 = arith.constant 0 : index
    %c0_11 = arith.constant 0 : index
    %21 = vector.load %arg5[%c0_10, %c0_11] : memref<32x24xf32, #tpu.memory_space<vmem>>, vector<32x24xf32>
    %cst_12 = arith.constant dense<0.000000e+00> : vector<32x128xf32>
    %22 = tpu.matmul %21, %16, %cst_12 {dimension_numbers = #tpu.dot_dimension_numbers<[1], [0], [0], [1], [0, 0, 1, 1], [], []>, precision = #tpu.contract_precision<fp32>} : vector<32x24xf32>, vector<24x128xf32>, vector<32x128xf32> -> vector<32x128xf32>
    %23 = arith.mulf %18, %20 : vector<32x128xf32>
    %cst_13 = arith.constant dense<0.000000e+00> : vector<128xf32>
    %24 = vector.multi_reduction <add>, %23, %cst_13 [0] : vector<32x128xf32> to vector<128xf32>
    %25 = vector.shape_cast %24 : vector<128xf32> to vector<1x128xf32>
    %c0_14 = arith.constant 0 : index
    %c0_15 = arith.constant 0 : index
    %26 = vector.load %arg6[%c0_14, %c0_15] : memref<2x128xf32, #tpu.memory_space<vmem>>, vector<1x128xf32>
    tpu.vector_store %arg6[%c0_14, %c0_15], %25 {strides = array<i32>} : memref<2x128xf32, #tpu.memory_space<vmem>>, vector<1x128xf32>,
    %27 = arith.mulf %18, %22 : vector<32x128xf32>
    %cst_16 = arith.constant dense<0.000000e+00> : vector<128xf32>
    %28 = vector.multi_reduction <add>, %27, %cst_16 [0] : vector<32x128xf32> to vector<128xf32>
    %29 = vector.shape_cast %28 : vector<128xf32> to vector<1x128xf32>
    %c1 = arith.constant 1 : index
    %c0_17 = arith.constant 0 : index
    %30 = vector.load %arg6[%c1, %c0_17] : memref<2x128xf32, #tpu.memory_space<vmem>>, vector<1x128xf32>
    tpu.vector_store %arg6[%c1, %c0_17], %29 {strides = array<i32>} : memref<2x128xf32, #tpu.memory_space<vmem>>, vector<1x128xf32>,
    return
  }
  func.func @transform_0(%arg0: i32) -> (i32, i32) {
    %c0_i32 = arith.constant 0 : i32
    %c0_i32_0 = arith.constant 0 : i32
    return %c0_i32, %arg0 : i32, i32
  }
  func.func @transform_1(%arg0: i32) -> (i32, i32) {
    %c0_i32 = arith.constant 0 : i32
    %c0_i32_0 = arith.constant 0 : i32
    return %c0_i32, %arg0 : i32, i32
  }
  func.func @transform_2(%arg0: i32) -> (i32, i32) {
    %c0_i32 = arith.constant 0 : i32
    %c0_i32_0 = arith.constant 0 : i32
    return %c0_i32, %arg0 : i32, i32
  }
  func.func @transform_3(%arg0: i32) -> (i32, i32) {
    %c0_i32 = arith.constant 0 : i32
    %c0_i32_0 = arith.constant 0 : i32
    %c0_i32_1 = arith.constant 0 : i32
    return %c0_i32, %c0_i32_0 : i32, i32
  }
  func.func @transform_4(%arg0: i32) -> (i32, i32) {
    %c0_i32 = arith.constant 0 : i32
    %c0_i32_0 = arith.constant 0 : i32
    %c0_i32_1 = arith.constant 0 : i32
    return %c0_i32, %c0_i32_0 : i32, i32
  }
  func.func @transform_5(%arg0: i32) -> (i32, i32) {
    %c0_i32 = arith.constant 0 : i32
    %c0_i32_0 = arith.constant 0 : i32
    return %c0_i32, %arg0 : i32, i32
  }
}

</mosaic_0001>

<bundles_post_ra>
// kernel: tpu_custom_call.1
= control target key start
LH: loop header
LB: loop body
LE: loop exit
PB: predicated region body
PF: predicated region fallthrough
CT: control target
= control target key end

     0   :  { %v24_v1 = vlaneseq  ;;  %vm68_vm0 = vcmask 130048   ;;  %v2449_v17 = vmov 0.0   ;;  %s2873_s0 = inlined_call_operand.vmem [shape: s32[1,128], index: 0, kind: input, shape index: {}]   ;;  %s2874_s1 = inlined_call_operand.vmem [shape: s32[1,128], index: 1, kind: input, shape index: {}]   ;;  %s2875_s2 = inlined_call_operand.vmem [shape: s32[1,128], index: 2, kind: input, shape index: {}]   ;;  %s2876_s3 = inlined_call_operand.vmem [shape: f32[32,16], index: 3, kind: input, shape index: {}]   ;;  %s2877_s4 = inlined_call_operand.vmem [shape: f32[32,24], index: 4, kind: input, shape index: {}]   ;;  %s2878_s5 = inlined_call_operand.hbm [shape: f32[2,128], index: 5, kind: output, shape index: {}]  }
   0x1   :  { %v1930_v0 = vld [vmem:[%s2873_s0] ss:$0 sm:$0xff]  ;;  %v65_v3 = vld [vmem:[%s2876_s3 + $0x8] sm:$0xff]  ;;  %v66_v4 = vld [vmem:[%s2876_s3 + $0x10] sm:$0xff] }
   0x2   :  { %v64_v2 = vld [vmem:[%s2876_s3] sm:$0xff]  ;;  %v67_v5 = vld [vmem:[%s2876_s3 + $0x18] sm:$0xff]  ;;  %v2498_v6 = vshrl.u32 %v24_v1, 7  ;;  %v73_v8 = vsel %vm68_vm0, %v65_v3, 0  ;;  %v76_v9 = vsel %vm68_vm0, %v66_v4, 0 }
   0x3   :  { %v70_v7 = vsel %vm68_vm0, %v64_v2, 0  ;;  %v2503_v10 = vld [vmem:[%s2875_s2] ss:$0 sm:$0xff]  ;;  %v2507_v12 = vand.u32 4294901760, %v73_v8  ;;  %v2509_v13 = vand.u32 4294901760, %v76_v9  ;;  %v79_v14 = vsel %vm68_vm0, %v67_v5, 0 }
   0x4   :  { %v2505_v11 = vand.u32 4294901760, %v70_v7  ;;  %v2512_v15 = vadd.s32 8, %v2498_v6  ;;  %vm32_vm1 = vcmp.eq.s32.totalorder %v2498_v6, %v1930_v0  ;;  %v2515_v16 = vand.u32 4294901760, %v79_v14 }
   0x5   :  { %vm55_vm2 = vcmp.eq.s32.totalorder %v2498_v6, %v2503_v10  ;;  %v1931_v18 = vsel %vm32_vm1, 1.0, %v2449_v17  ;;  %v2524_v20 = vsub.f32 %v73_v8, %v2507_v12  ;;  %v2527_v21 = vsub.f32 %v76_v9, %v2509_v13 }
   0x6   :  { %v2521_v19 = vsub.f32 %v70_v7, %v2505_v11 }
   0x7   :  { %10 = vsyncpa [#allocation3], 0  ;;  %vm33_vm3 = vcmp.eq.s32.totalorder %v2512_v15, %v1930_v0  ;;  %v2531_v22 = vsub.f32 %v79_v14, %v2515_v16  ;;  %v190_v23 = vsub.f32 %v1931_v18, %v1931_v18  ;;  %vm56_vm4 = vcmp.eq.s32.totalorder %v2512_v15, %v2503_v10  ;;  %v1933_v41 = vld [vmem:[%s2874_s1] ss:$0 sm:$0xff]  ;;  %v670_v52 = vld [vmem:[%s2877_s4 + $0x8] sm:$0xff] }
   0x8   :  { %v1932_v24 = vsel %vm33_vm3, 1.0, %v2449_v17  ;;  %vm2536_vm5 = vmpackc.low %vm33_vm3, %vm32_vm1  ;;  %v150_v26 = vand.u32 4294901760, %v2521_v19  ;;  %v160_v27 = vand.u32 4294901760, %v2524_v20  ;;  %v170_v28 = vand.u32 4294901760, %v2527_v21  ;;  %v669_v45 = vld [vmem:[%s2877_s4] sm:$0xff]  ;;  %v671_v57 = vld [vmem:[%s2877_s4 + $0x10] sm:$0xff] }
   0x9   :  { %v2450_v29 = vmov 1.0|1.0   ;;  %v180_v30 = vand.u32 4294901760, %v2531_v22  ;;  %v191_v31 = vand.u32 4294901760, %v190_v23  ;;  %v197_v32 = vsub.f32 %v1932_v24, %v1932_v24  ;;  %v672_v1 = vld [vmem:[%s2877_s4 + $0x18] sm:$0xff]  ;;  %vm2625_vm9 = vmpackc.low %vm56_vm4, %vm55_vm2  ;;  %s2452_s4 = smov [#allocation2]  }
   0xa   :  { %2302 = vmatprep.subr.msk.bf16.mxu0 %vm2536_vm5, %v2450_v29  ;;  %2290 = vmatprep.subr.msk.bf16.mxu1 %vm2536_vm5, %v2450_v29  ;;  %v151_v33 = vsub.f32 %v2521_v19, %v150_v26  ;;  %v161_v34 = vsub.f32 %v2524_v20, %v160_v27  ;;  %v171_v35 = vsub.f32 %v2527_v21, %v170_v28  ;;  %v1938_v36 = vsel %vm55_vm2, 1.0, %v2449_v17  ;;  %s1922_s11 = sshll.u32 %s2452_s4, 4  ;;  %s1923_s11 = int_to_ptr.vmem [resolvable:$true] %s1922_s11 }
   0xb   :  { %2304 = vmatpush3.bf16.msk.msra.mxu0 %vm2536_vm5, %v2450_v29  ;;  %2292 = vmatpush3.bf16.msk.msra.mxu1 %vm2536_vm5, %v2450_v29  ;;  %v198_v37 = vand.u32 4294901760, %v197_v32  ;;  %v181_v38 = vsub.f32 %v2531_v22, %v180_v30  ;;  %v192_v39 = vsub.f32 %v190_v23, %v191_v31  ;;  %v1939_v40 = vsel %vm56_vm4, 1.0, %v2449_v17  ;;  %s2425_s12 = scalar_lea.vmem %s1923_s11, 32  ;;  %p2430_p1 = scmp.lt.s32.totalorder %s1923_s11, %s1923_s11 }
   0xc   :  { %2119 = vmatprep.mubr.f32.mxu0 %v150_v26  ;;  %v152_v42 = vand.u32 4294901760, %v151_v33  ;;  %v162_v43 = vand.u32 4294901760, %v161_v34  ;;  %v172_v44 = vand.u32 4294901760, %v171_v35  ;;  %vm673_vm6 = vcmask 195584   ;;  %p2426_p0 = scmp.ne.s32.totalorder %s1923_s11, %s2425_s12  ;;  %p2431_p2 = scmp.lt.s32.totalorder %s2425_s12, %s2425_s12 }
   0xd   :  { %v2305_v46 = vpack.c.bf16 %v198_v37, %v191_v31  ;;  %v193_v47 = vand.u32 4294901760, %v192_v39  ;;  %v199_v48 = vsub.f32 %v197_v32, %v198_v37  ;;  %v2574_v49 = vsub.f32 %v1938_v36, %v1938_v36 }
   0xe   :  { %2120 = vmatmul.mubr.f32.vlgmr.msra.gmra.mrb[0].mxu0 %v160_v27  ;;  %2089 = vmatprep.mubr.f32.mxu1 %v152_v42  ;;  %v182_v50 = vand.u32 4294901760, %v181_v38  ;;  %v2576_v51 = vsub.f32 %v1939_v40, %v1939_v40  ;;  %vm42_vm7 = vcmp.eq.s32.totalorder %v2498_v6, %v1933_v41  ;;  %vm43_vm8 = vcmp.eq.s32.totalorder %v2512_v15, %v1933_v41  ;;  %p2432_p3 = por %p2431_p2, %p2430_p1 }
   0xf   :  { %2122 = vmatprep.mubr.f32.mxu0 %v170_v28  ;;  %2090 = vmatmul.mubr.f32.vlgmr.msra.gmra.mrb[0].mxu1 %v162_v43  ;;  %v200_v53 = vand.u32 4294901760, %v199_v48  ;;  %v1934_v54 = vsel %vm42_vm7, 1.0, %v2449_v17  ;;  %v1935_v55 = vsel %vm43_vm8, 1.0, %v2449_v17  ;;  %v675_v56 = vsel %vm673_vm6, %v669_v45, 0  ;;  %vm2649_vm11 = vmpackc.low %vm43_vm8, %vm42_vm7 }
  0x10   :  { %2306 = vmatprep.subr.bf16.mxu0 %v2305_v46  ;;  %2092 = vmatprep.mubr.f32.mxu1 %v172_v44  ;;  %v2593_v58 = vsub.f32 %v1934_v54, %v1934_v54  ;;  %v2595_v59 = vsub.f32 %v1935_v55, %v1935_v55  ;;  %v27_v60 = vadd.s32 16, %v2498_v6  ;;  %v2598_v61 = vand.u32 4294901760, %v675_v56  ;;  %p2433_p4 = pnand %p2432_p3, %p2426_p0 }
  0x11   :  { %2308 = vmatpush3.bf16.msra.mxu0 %v2305_v46  ;;  %v2293_v62 = vpack.c.bf16 %v200_v53, %v193_v47  ;;  %v2297_v63 = vpack.c.bf16 %v197_v32, %v190_v23  ;;  %v678_v0 = vsel %vm673_vm6, %v670_v52, 0  ;;  %v681_v4 = vsel %vm673_vm6, %v671_v57, 0 }
  0x12   :  { %2123 = vmatmul.mubr.f32.gmra.mrb[2].mxu0 %v180_v30  ;;  %2310 = vmatprep.subr.msk.bf16.mxu0 %vm2536_vm5, %v2450_v29  ;;  %v2609_v2 = vsub.f32 %v675_v56, %v2598_v61  ;;  %v2611_v3 = vand.u32 4294901760, %v678_v0  ;;  %v1398_v5 = vand.u32 4294901760, %v2574_v49  ;;  %v1405_v7 = vand.u32 4294901760, %v2576_v51 }
  0x13   :  { %2129 = vmatprep.mubr.f32.mxu0 %v2505_v11  ;;  %2093 = vmatmul.mubr.f32.gmra.mrb[2].mxu1 %v182_v50  ;;  %v2616_v8 = vand.u32 4294901760, %v681_v4  ;;  %vm2630_vm10 = vcmp.eq.s32.totalorder %v27_v60, %v2503_v10  ;;  %v797_v18 = vand.u32 4294901760, %v2593_v58  ;;  %v804_v23 = vand.u32 4294901760, %v2595_v59 }
  0x14   :  { %2294 = vmatprep.subr.bf16.mxu1 %v2293_v62  ;;  %2099 = vmatprep.mubr.f32.mxu1 %v2505_v11  ;;  %v684_v24 = vsel %vm673_vm6, %v672_v1, 0  ;;  %v2639_v26 = vsub.f32 %v678_v0, %v2611_v3  ;;  %v2654_v27 = vand.u32 4294901760, %v2609_v2  ;;  %vm2656_vm12 = vcmp.eq.s32.totalorder %v27_v60, %v1933_v41 }
  0x15   :  { %2296 = vmatpush3.bf16.msra.mxu1 %v2293_v62  ;;  %v2661_v30 = vsub.f32 %v681_v4, %v2616_v8  ;;  %v2663_v25 = vand.u32 4294901760, %v684_v24  ;;  %v1399_v6 = vsub.f32 %v2574_v49, %v1398_v5  ;;  %v1406_v15 = vsub.f32 %v2576_v51, %v1405_v7 }
  0x16   :  { %2130 = vmatmul.mubr.f32.vlgmr.msra.gmra.mrb[0].mxu0 %v2507_v12  ;;  %2298 = vmatprep.subr.bf16.mxu1 %v2297_v63  ;;  %v1940_v31 = vsel %vm2630_vm10, 1.0, %v2449_v17  ;;  %v798_v32 = vsub.f32 %v2593_v58, %v797_v18  ;;  %v805_v33 = vsub.f32 %v2595_v59, %v804_v23  ;;  %v2690_v34 = vand.u32 4294901760, %v2639_v26 }
  0x17   :  { %2132 = vmatprep.mubr.f32.mxu0 %v2509_v13  ;;  %2312 = vmatpush3.bf16.msk.msra.mxu0 %vm2536_vm5, %v2450_v29  ;;  %v2693_v35 = vsub.f32 %v684_v24, %v2663_v25  ;;  %v2695_v36 = vsub.f32 %v1940_v31, %v1940_v31  ;;  %v1936_v37 = vsel %vm2656_vm12, 1.0, %v2449_v17  ;;  %v757_v38 = vsub.f32 %v2609_v2, %v2654_v27 }
  0x18   :  { %2100 = vmatmul.mubr.f32.vlgmr.msra.gmra.mrb[0].mxu1 %v2507_v12  ;;  %2338 = vmatprep.subr.msk.bf16.mxu0 %vm2625_vm9, %v2450_v29  ;;  %v2704_v39 = vand.u32 4294901760, %v2661_v30  ;;  %v2706_v40 = vsub.f32 %v1936_v37, %v1936_v37  ;;  %v1400_v41 = vand.u32 4294901760, %v1399_v6  ;;  %v1407_v42 = vand.u32 4294901760, %v1406_v15 }
  0x19   :  { %2102 = vmatprep.mubr.f32.mxu1 %v2509_v13  ;;  %2300 = vmatpush3.bf16.msra.mxu1 %v2297_v63  ;;  %v2710_v43 = vand.u32 4294901760, %v2695_v36  ;;  %v799_v17 = vand.u32 4294901760, %v798_v32  ;;  %v806_v44 = vand.u32 4294901760, %v805_v33  ;;  %v2717_v45 = vand.u32 4294901760, %v2693_v35 }
  0x1a   :  { %2133 = vmatmul.mubr.f32.gmra.mrb[2].mxu0 %v2515_v16  ;;  %2314 = vmatprep.subr.msk.bf16.mxu1 %vm2649_vm11, %v2450_v29  ;;  %v2720_v46 = vand.u32 4294901760, %v2706_v40  ;;  %v2451_v47 = vmov 1.0   ;;  %v2341_v48 = vpack.c.bf16 %v1407_v42, %v1400_v41  ;;  %v2345_v56 = vpack.c.bf16 %v2576_v51, %v2574_v49 }
  0x1b   :  { %2139 = vmatprep.mubr.f32.mxu0 %v2505_v11  ;;  %v767_v11 = vsub.f32 %v2639_v26, %v2690_v34  ;;  %v1413_v50 = vsub.f32 %v2695_v36, %v2710_v43  ;;  %v787_v52 = vsub.f32 %v2693_v35, %v2717_v45  ;;  %v2353_v57 = vpack.c.bf16 %v1405_v7, %v1398_v5 }
  0x1c   :  { %2103 = vmatmul.mubr.f32.gmra.mrb[2].mxu1 %v2515_v16  ;;  %v812_v53 = vsub.f32 %v2706_v40, %v2720_v46  ;;  %v2329_v49 = vpack.c.bf16 %v804_v23, %v797_v18 }
  0x1d   :  { %2109 = vmatprep.mubr.f32.mxu1 %v2521_v19  ;;  %v758_v19 = vand.u32 4294901760, %v757_v38  ;;  %v788_v54 = vand.u32 4294901760, %v787_v52 }
  0x1e   :  { %2140 = vmatmul.mubr.f32.vlgmr.msra.gmra.mrb[0].mxu0 %v2507_v12  ;;  %v777_v12 = vsub.f32 %v2661_v30, %v2704_v39  ;;  %v813_v55 = vand.u32 4294901760, %v812_v53 }
  0x1f   :  { %2142 = vmatprep.mubr.f32.mxu0 %v2509_v13  ;;  %2340 = vmatpush3.bf16.msk.msra.mxu0 %vm2625_vm9, %v2450_v29  ;;  %v768_v13 = vand.u32 4294901760, %v767_v11 }
  0x20   :  { %2110 = vmatmul.mubr.f32.vlgmr.msra.gmra.mrb[0].mxu1 %v2524_v20  ;;  %2221 = vmatprep.subr.msk.mxu0 %vm2630_vm10, %v2451_v47  ;;  %v2317_v20 = vpack.c.bf16 %v806_v44, %v799_v17 }
  0x21   :  { %2112 = vmatprep.mubr.f32.mxu1 %v2527_v21  ;;  %2316 = vmatpush3.bf16.msk.msra.mxu1 %vm2649_vm11, %v2450_v29  ;;  %v778_v21 = vand.u32 4294901760, %v777_v12 }
  0x22   :  { %2143 = vmatmul.mubr.f32.gmra.mrb[2].mxu0 %v2515_v16  ;;  %2149 = vmatprep.subr.msk.mxu1 %vm2656_vm12, %v2451_v47  ;;  %v1414_v16 = vand.u32 4294901760, %v1413_v50 }
  0x23   :  { %2222 = vmatpush3.msk.msra.mxu0 %vm2630_vm10, %v2451_v47  ;;  %2223 = vmatprep.mubr.f32.mxu0 %v758_v19 }
  0x24   :  { %2113 = vmatmul.mubr.f32.gmra.mrb[2].mxu1 %v2531_v22  ;;  %2342 = vmatprep.subr.bf16.mxu0 %v2341_v48  ;;  %v2321_v22 = vpack.c.bf16 %v2595_v59, %v2593_v58 }
  0x25   :  { %2150 = vmatpush3.msk.msra.mxu1 %vm2656_vm12, %v2451_v47  ;;  %2151 = vmatprep.mubr.f32.mxu1 %v758_v19 }
  0x26   :  { %2224 = vmatmul.mubr.f32.vlgmr.msra.gmra.mrb[4].mxu0 %v768_v13  ;;  %2318 = vmatprep.subr.bf16.mxu1 %v2317_v20 }
  0x27   :  { %2226 = vmatprep.mubr.f32.mxu0 %v778_v21  ;;  %2344 = vmatpush3.bf16.msra.mxu0 %v2341_v48 }
  0x28   :  { %2152 = vmatmul.mubr.f32.vlgmr.msra.gmra.mrb[4].mxu1 %v768_v13  ;;  %2233 = vmatprep.subr.mxu0 %v1414_v16 }
  0x29   :  { %2154 = vmatprep.mubr.f32.mxu1 %v778_v21  ;;  %2320 = vmatpush3.bf16.msra.mxu1 %v2317_v20 }
  0x2a   :  { %2227 = vmatmul.mubr.f32.gmra.mrb[6].mxu0 %v788_v54  ;;  %2161 = vmatprep.subr.mxu1 %v813_v55 }
  0x2b   :  { %2234 = vmatpush3.msra.mxu0 %v1414_v16  ;;  %2235 = vmatprep.mubr.f32.mxu0 %v2598_v61 }
  0x2c   :  { %2155 = vmatmul.mubr.f32.gmra.mrb[6].mxu1 %v788_v54  ;;  %2346 = vmatprep.subr.bf16.mxu0 %v2345_v56 }
  0x2d   :  { %2162 = vmatpush3.msra.mxu1 %v813_v55  ;;  %2163 = vmatprep.mubr.f32.mxu1 %v2598_v61 }
  0x2e   :  { %2236 = vmatmul.mubr.f32.vlgmr.msra.gmra.mrb[4].mxu0 %v2611_v3  ;;  %2322 = vmatprep.subr.bf16.mxu1 %v2321_v22 }
  0x2f   :  { %2238 = vmatprep.mubr.f32.mxu0 %v2616_v8  ;;  %2348 = vmatpush3.bf16.msra.mxu0 %v2345_v56 }
  0x30   :  { %2164 = vmatmul.mubr.f32.vlgmr.msra.gmra.mrb[4].mxu1 %v2611_v3  ;;  %2245 = vmatprep.subr.mxu0 %v2695_v36 }
  0x31   :  { %2166 = vmatprep.mubr.f32.mxu1 %v2616_v8  ;;  %2324 = vmatpush3.bf16.msra.mxu1 %v2321_v22 }
  0x32   :  { %2239 = vmatmul.mubr.f32.gmra.mrb[6].mxu0 %v2663_v25  ;;  %2173 = vmatprep.subr.mxu1 %v2706_v40 }
  0x33   :  { %2246 = vmatpush3.msra.mxu0 %v2695_v36  ;;  %2247 = vmatprep.mubr.f32.mxu0 %v2609_v2 }
  0x34   :  { %2167 = vmatmul.mubr.f32.gmra.mrb[6].mxu1 %v2663_v25  ;;  %2350 = vmatprep.subr.msk.bf16.mxu0 %vm2625_vm9, %v2450_v29 }
  0x35   :  { %2174 = vmatpush3.msra.mxu1 %v2706_v40  ;;  %2175 = vmatprep.mubr.f32.mxu1 %v2609_v2 }
  0x36   :  { %2248 = vmatmul.mubr.f32.vlgmr.msra.gmra.mrb[4].mxu0 %v2639_v26  ;;  %2326 = vmatprep.subr.msk.bf16.mxu1 %vm2649_vm11, %v2450_v29 }
  0x37   :  { %2250 = vmatprep.mubr.f32.mxu0 %v2661_v30  ;;  %2352 = vmatpush3.bf16.msk.msra.mxu0 %vm2625_vm9, %v2450_v29 }
  0x38   :  { %2176 = vmatmul.mubr.f32.vlgmr.msra.gmra.mrb[4].mxu1 %v2639_v26  ;;  %2257 = vmatprep.subr.msk.mxu0 %vm2630_vm10, %v2451_v47 }
  0x39   :  { %2178 = vmatprep.mubr.f32.mxu1 %v2661_v30  ;;  %2328 = vmatpush3.bf16.msk.msra.mxu1 %vm2649_vm11, %v2450_v29 }
  0x3a   :  { %2251 = vmatmul.mubr.f32.gmra.mrb[6].mxu0 %v2693_v35  ;;  %2185 = vmatprep.subr.msk.mxu1 %vm2656_vm12, %v2451_v47 }
  0x3b   :  { %2258 = vmatpush3.msk.msra.mxu0 %vm2630_vm10, %v2451_v47  ;;  %2259 = vmatprep.mubr.f32.mxu0 %v2654_v27 }
  0x3c   :  { %2179 = vmatmul.mubr.f32.gmra.mrb[6].mxu1 %v2693_v35  ;;  %2354 = vmatprep.subr.bf16.mxu0 %v2353_v57 }
  0x3d   :  { %2186 = vmatpush3.msk.msra.mxu1 %vm2656_vm12, %v2451_v47  ;;  %2187 = vmatprep.mubr.f32.mxu1 %v2654_v27 }
  0x3e   :  { %2260 = vmatmul.mubr.f32.vlgmr.msra.gmra.mrb[4].mxu0 %v2690_v34  ;;  %2330 = vmatprep.subr.bf16.mxu1 %v2329_v49 }
  0x3f   :  { %2262 = vmatprep.mubr.f32.mxu0 %v2704_v39  ;;  %2356 = vmatpush3.bf16.msra.mxu0 %v2353_v57 }
  0x40   :  { %2188 = vmatmul.mubr.f32.vlgmr.msra.gmra.mrb[4].mxu1 %v2690_v34  ;;  %2269 = vmatprep.subr.mxu0 %v2710_v43 }
  0x41   :  { %2190 = vmatprep.mubr.f32.mxu1 %v2704_v39  ;;  %2332 = vmatpush3.bf16.msra.mxu1 %v2329_v49 }
  0x42   :  { %2263 = vmatmul.mubr.f32.gmra.mrb[6].mxu0 %v2717_v45  ;;  %2197 = vmatprep.subr.mxu1 %v2720_v46 }
  0x43   :  { %2270 = vmatpush3.msra.mxu0 %v2710_v43  ;;  %2271 = vmatprep.mubr.f32.mxu0 %v2598_v61 }
  0x44   :  { %2191 = vmatmul.mubr.f32.gmra.mrb[6].mxu1 %v2717_v45  ;;  %2358 = vmatprep.subr.msk.bf16.mxu0 %vm2625_vm9, %v2450_v29 }
  0x45   :  { %2198 = vmatpush3.msra.mxu1 %v2720_v46  ;;  %2199 = vmatprep.mubr.f32.mxu1 %v2598_v61 }
  0x46   :  { %2272 = vmatmul.mubr.f32.vlgmr.msra.gmra.mrb[4].mxu0 %v2611_v3  ;;  %2334 = vmatprep.subr.msk.bf16.mxu1 %vm2649_vm11, %v2450_v29 }
  0x47   :  { %2274 = vmatprep.mubr.f32.mxu0 %v2616_v8  ;;  %2360 = vmatpush3.bf16.msk.msra.mxu0 %vm2625_vm9, %v2450_v29 }
  0x48   :  { %2200 = vmatmul.mubr.f32.vlgmr.msra.gmra.mrb[4].mxu1 %v2611_v3  ;;  %2281 = vmatprep.subr.msk.mxu0 %vm2630_vm10, %v2451_v47 }
  0x49   :  { %2202 = vmatprep.mubr.f32.mxu1 %v2616_v8  ;;  %2336 = vmatpush3.bf16.msk.msra.mxu1 %vm2649_vm11, %v2450_v29 }
  0x4a   :  { %2275 = vmatmul.mubr.f32.gmra.mrb[6].mxu0 %v2663_v25  ;;  %2209 = vmatprep.subr.msk.mxu1 %vm2656_vm12, %v2451_v47 }
  0x4b   :  { %2282 = vmatpush3.msk.msra.mxu0 %vm2630_vm10, %v2451_v47  ;;  %2283 = vmatprep.mubr.f32.mxu0 %v2598_v61 }
  0x4c   :  { %2203 = vmatmul.mubr.f32.gmra.mrb[6].mxu1 %v2663_v25 }
  0x4d   :  { %2210 = vmatpush3.msk.msra.mxu1 %vm2656_vm12, %v2451_v47  ;;  %2211 = vmatprep.mubr.f32.mxu1 %v2598_v61 }
  0x4e   :  { %2284 = vmatmul.mubr.f32.vlgmr.msra.gmra.mrb[4].mxu0 %v2611_v3 }
  0x4f   :  { %2286 = vmatprep.mubr.f32.mxu0 %v2616_v8 }
  0x50   :  { %2212 = vmatmul.mubr.f32.vlgmr.msra.gmra.mrb[4].mxu1 %v2611_v3 }
  0x51   :  { %2214 = vmatprep.mubr.f32.mxu1 %v2616_v8 }
  0x52   :  { %2287 = vmatmul.mubr.f32.gmra.mrb[6].mxu0 %v2663_v25 }
  0x54   :  { %2215 = vmatmul.mubr.f32.gmra.mrb[6].mxu1 %v2663_v25 }
  0xf1   :  { %v2141_v29 = vpop.f32.mrb[0].mxu0 }
  0xf2   :  { %v647_v51 = vpop.f32.mrb[1].mxu0 }
  0xf3   :  { %v2111_v58 = vpop.f32.mrb[0].mxu1 }
  0xf4   :  { %v2361_v59 = vadd.f32 %v2141_v29, %v2111_v58  ;;  %v359_v60 = vpop.f32.mrb[1].mxu1 }
  0xf5   :  { %v2362_v62 = vadd.f32 %v647_v51, %v359_v60  ;;  %v2144_v63 = vpop.f32.mrb[2].mxu0 }
  0xf6   :  { %v659_v61 = vpop.f32.mrb[3].mxu0 }
  0xf7   :  { %v2114_v0 = vpop.f32.mrb[2].mxu1 }
  0xf8   :  { %v2363_v1 = vadd.f32 %v2144_v63, %v2114_v0  ;;  %v373_v2 = vpop.f32.mrb[3].mxu1 }
  0xf9   :  { %v2364_v4 = vadd.f32 %v659_v61, %v373_v2 }
 0x121   :  { %v2285_v5 = vpop.f32.mrb[4].mxu0 }
 0x122   :  { %v1903_v3 = vmul.f32 %v2361_v59, %v2285_v5  ;;  %v1866_v7 = vpop.f32.mrb[5].mxu0 }
 0x123   :  { %v1902_v8 = vmul.f32 %v2362_v62, %v1866_v7  ;;  %v2213_v9 = vpop.f32.mrb[4].mxu1 }
 0x124   :  { %v1889_v14 = vmul.f32 %v2361_v59, %v2213_v9  ;;  %v1265_v18 = vpop.f32.mrb[5].mxu1 }
 0x125   :  { %v1906_v23 = vadd.f32 %v1903_v3, %v1902_v8  ;;  %v1888_v24 = vmul.f32 %v2362_v62, %v1265_v18  ;;  %v2288_v26 = vpop.f32.mrb[6].mxu0 }
 0x126   :  { %v1905_v10 = vmul.f32 %v2363_v1, %v2288_v26  ;;  %v1878_v27 = vpop.f32.mrb[7].mxu0 }
 0x127   :  { %v1892_v28 = vadd.f32 %v1889_v14, %v1888_v24  ;;  %v1904_v30 = vmul.f32 %v2364_v4, %v1878_v27  ;;  %v2216_v25 = vpop.f32.mrb[6].mxu1 }
 0x128   :  { %v1891_v6 = vmul.f32 %v2363_v1, %v2216_v25  ;;  %v1277_v15 = vpop.f32.mrb[7].mxu1 }
 0x129   :  { %v1907_v31 = vadd.f32 %v1906_v23, %v1904_v30  ;;  %v1890_v32 = vmul.f32 %v2364_v4, %v1277_v15 }
 0x12b   :  { %v1908_v33 = vadd.f32 %v1907_v31, %v1905_v10  ;;  %v1893_v34 = vadd.f32 %v1892_v28, %v1890_v32 }
 0x12d   :  { %v1909_v35 = vrot.slane %v1908_v33, 4  ;;  %v1894_v36 = vadd.f32 %v1893_v34, %v1891_v6 }
 0x12f   :  { %v1910_v37 = vadd.f32 %v1909_v35, %v1908_v33  ;;  %v1895_v38 = vrot.slane %v1894_v36, 4 }
 0x131   :  { %v1896_v39 = vadd.f32 %v1895_v38, %v1894_v36  ;;  %v1911_v40 = vrot.slane %v1910_v37, 2 }
 0x133   :  { %v1897_v41 = vrot.slane %v1896_v39, 2  ;;  %v1912_v42 = vadd.f32 %v1911_v40, %v1910_v37 }
 0x135   :  { %v1898_v43 = vadd.f32 %v1897_v41, %v1896_v39  ;;  %v1913_v17 = vrot.slane %v1912_v42, 1 }
 0x137   :  { %v1899_v11 = vrot.slane %v1898_v43, 1  ;;  %v1914_v44 = vadd.f32 %v1913_v17, %v1912_v42 }
 0x139   :  { %v1900_v45 = vadd.f32 %v1899_v11, %v1898_v43  ;;  %1915 = vst [vmem:[#allocation2 + $0x1] sm:$0x1] %v1914_v44 }
 0x13b   :  { %1901 = vst [vmem:[#allocation2] sm:$0x1] %v1900_v45 }
 0x13c   :  { %2436 = shalt.err (!%p2433_p4)
}
 0x13d   :  { %s2437_s15 = scalar_lea.hbm %s2878_s5, 32 }
 0x13e   :  { %p2438_p5 = scmp.ne.s32.totalorder %s2878_s5, %s2437_s15  ;;  %p2441_p6 = scmp.lt.u32.totalorder %s2437_s15, %s2878_s5 }
 0x140   :  { %p2443_p7 = pnand %p2441_p6, %p2438_p5 }
 0x142   :  { %2446 = shalt.err (!%p2443_p7)
}
 0x143   :  { %1925 = dma.vmem_to_hbm [thread:$0]  %s1923_s11, 32, %s2878_s5, [#allocation3]  }
 0x144   :  { %2447 = dma.done.wait [#allocation3], 32  }
 0x145   :  { %2448 = vsyncadd [#allocation3], 4294967264 }
 0x146   :  { %1929 = vsyncpa [#allocation3], 1 }

</bundles_post_ra>
